<compile_context>
chip_gen: v7x
topology: tpu7x:2x2x1
jax: 0.10.0
libtpu: 0.0.40
codegen_flags: <defaults>
</compile_context>

<pallas_src>
import numpy as np
import jax
import jax.numpy as jnp
from jax.experimental import pallas as pl
from jax.experimental.pallas import tpu as pltpu


def _round_up(x, m):
    return ((x + m - 1) // m) * m


def _pick_tile(total, want, min_programs=1):
    """Lane-aligned tile along an axis; optionally force >=min_programs tiles
    (v7x has 2 TensorCores sharded over parallel grid axes)."""
    t = min(want, total)
    if t >= 128:
        t = (t // 128) * 128
    if (min_programs > 1 and pl.cdiv(total, t) < min_programs
            and total >= min_programs * 128):
        t = _round_up(pl.cdiv(total, min_programs), 128)
    return t


# ----------------------------------------------------------------------------
# Pallas kernels
# ----------------------------------------------------------------------------

def _blend_kernel(sc_ref, pc_ref, vt_ref, sd_ref, pd_ref, out_ref):
    # v_posed = v_template + betas @ shapedirs (f32) + pose_feature @ posedirs (bf16)
    off_s = jnp.dot(sc_ref[...], sd_ref[...],
                    preferred_element_type=jnp.float32)          # (B, TILE)
    off_p = jnp.dot(pc_ref[...], pd_ref[...],
                    preferred_element_type=jnp.float32)          # (B, TILE)
    out_ref[...] = vt_ref[...] + off_s + off_p                   # vt broadcasts (1,TILE)


def blend_pallas(sc, pc, vt_cm, sd_cm, pd_cm, tile=4096):
    """sc (B, NBp) f32, pc (B, Pp) bf16, vt_cm (1, 3V) f32,
    sd_cm (NBp, 3V) f32, pd_cm (Pp, 3V) bf16  ->  (B, 3V) f32 (coord-major)."""
    B, NBp = sc.shape
    Pp = pc.shape[1]
    V3 = vt_cm.shape[1]
    tile = _pick_tile(V3, tile, min_programs=2)
    grid = (pl.cdiv(V3, tile),)
    return pl.pallas_call(
        _blend_kernel,
        grid=grid,
        in_specs=[pl.BlockSpec((B, NBp), lambda i: (0, 0)),       # resident
                  pl.BlockSpec((B, Pp), lambda i: (0, 0)),        # resident
                  pl.BlockSpec((1, tile), lambda i: (0, i)),
                  pl.BlockSpec((NBp, tile), lambda i: (0, i)),
                  pl.BlockSpec((Pp, tile), lambda i: (0, i))],
        out_specs=pl.BlockSpec((B, tile), lambda i: (0, i)),
        out_shape=jax.ShapeDtypeStruct((B, V3), jnp.float32),
        compiler_params=pltpu.CompilerParams(
            dimension_semantics=("parallel",)),
    )(sc, pc, vt_cm, sd_cm, pd_cm)


def _skin_kernel(wt_ref, at_ref, vp_ref, out_ref):
    # T_t[r, v] = sum_j A12[b, r, j] * W_t[j, v]  -> (12, TV), V lane-dense.
    # Row groups (precomputed permutation): 0:3 -> coeff of vx, 3:6 -> vy,
    # 6:9 -> vz, 9:12 -> translation.
    T_t = jnp.dot(at_ref[0], wt_ref[...],
                  preferred_element_type=jnp.float32)             # (12, TV)
    vp = vp_ref[0]                                                # (3, TV)
    vx = vp[0:1, :]
    vy = vp[1:2, :]
    vz = vp[2:3, :]
    out_ref[0] = (T_t[0:3, :] * vx + T_t[3:6, :] * vy
                  + T_t[6:9, :] * vz + T_t[9:12, :])              # one (3,TV) store


def skin_pallas(w_t, a_t12, v_posed_cm, tile_v=2048):
    """w_t (J, V) f32, a_t12 (B, 12, J) f32, v_posed_cm (B, 3, V) f32 -> (B, 3, V)."""
    Jn, V = w_t.shape
    B = a_t12.shape[0]
    # B is already a parallel grid axis; only force a V split if B == 1.
    tv = _pick_tile(V, tile_v, min_programs=2 if B == 1 else 1)
    # Grid order (v_tiles, B): the W^T block depends only on the outer axis, so
    # it stays resident in VMEM across the whole batch (no B-fold re-DMA).
    grid = (pl.cdiv(V, tv), B)
    return pl.pallas_call(
        _skin_kernel,
        grid=grid,
        in_specs=[pl.BlockSpec((Jn, tv), lambda v, b: (0, v)),
                  pl.BlockSpec((1, 12, Jn), lambda v, b: (b, 0, 0)),
                  pl.BlockSpec((1, 3, tv), lambda v, b: (b, 0, v))],
        out_specs=pl.BlockSpec((1, 3, tv), lambda v, b: (b, 0, v)),
        out_shape=jax.ShapeDtypeStruct((B, 3, V), jnp.float32),
        compiler_params=pltpu.CompilerParams(
            dimension_semantics=("parallel", "parallel")),
    )(w_t, a_t12, v_posed_cm)


# ----------------------------------------------------------------------------
# Plain-JAX glue (small, sequential, or shape plumbing)
# ----------------------------------------------------------------------------

def batch_rodrigues(rot_vecs, eps=1e-8):
    angle = jnp.linalg.norm(rot_vecs + eps, axis=1, keepdims=True)          # (N,1)
    rot_dir = rot_vecs / angle
    cos = jnp.cos(angle)[..., None]                                         # (N,1,1)
    sin = jnp.sin(angle)[..., None]
    rx, ry, rz = jnp.split(rot_dir, 3, axis=1)
    zeros = jnp.zeros_like(rx)
    K = jnp.concatenate([zeros, -rz, ry,
                         rz, zeros, -rx,
                         -ry, rx, zeros], axis=1).reshape(-1, 3, 3)
    ident = jnp.eye(3, dtype=rot_vecs.dtype)[None]
    return ident + sin * K + (1.0 - cos) * jnp.matmul(K, K)


def batch_rigid_transform(rot_mats, joints, parents):
    # TODO(synk): 24-joint kinematic chain is inherently sequential & tiny;
    # kept in plain JAX rather than a Pallas kernel.
    B, Jn = joints.shape[:2]
    joints = joints[..., None]                                              # (B,J,3,1)
    rel_joints = joints.at[:, 1:].add(-joints[:, parents[1:]])
    R = rot_mats.reshape(-1, 3, 3)
    t = rel_joints.reshape(-1, 3, 1)
    bottom = jnp.tile(jnp.array([[[0., 0., 0., 1.]]], dtype=R.dtype),
                      (R.shape[0], 1, 1))
    tm = jnp.concatenate([jnp.concatenate([R, t], axis=2), bottom],
                         axis=1).reshape(B, Jn, 4, 4)
    chain = [tm[:, 0]]
    for i in range(1, Jn):                                                  # 24 joints
        chain.append(jnp.matmul(chain[int(parents[i])], tm[:, i]))
    transforms = jnp.stack(chain, axis=1)                                   # (B,J,4,4)
    posed_joints = transforms[:, :, :3, 3]
    joints_h = jnp.concatenate(
        [joints, jnp.zeros((B, Jn, 1, 1), R.dtype)], axis=2)                # (B,J,4,1)
    tmp = jnp.matmul(transforms, joints_h)                                  # (B,J,4,1)
    rel = transforms - jnp.concatenate(
        [jnp.zeros((B, Jn, 4, 3), R.dtype), tmp], axis=3)
    return posed_joints, rel


def prepare_body_model_constants(params):
    """One-time precomputation of the constant tensors the kernels consume
    (in production these are cached module buffers, not per-call work)."""
    v_template = params['v_template']            # (V, 3)
    shapedirs = params['shapedirs']              # (V, 3, NB)
    posedirs = params['posedirs']                # (P, V*3)  (.reshape(V*3,P).T form)
    J_regressor = params['J_regressor']          # (J, V)
    weights = params['weights']                  # (V, J)
    parents = np.asarray(params['parents'])      # (J,)

    V = v_template.shape[0]
    NB = shapedirs.shape[2]
    P = posedirs.shape[0]
    Jn = J_regressor.shape[0]

    NBp = _round_up(NB, 8)      # f32 sublane group
    Pp = _round_up(P, 16)       # bf16 sublane group

    # Coord-major (c*V + v) direction slabs so the blend output is directly the
    # (B, 3, V) layout the skin kernel consumes (no HBM transpose in between).
    sd_cm = shapedirs.transpose(1, 0, 2).reshape(3 * V, NB).T               # (NB, 3V)
    sd_cm = jnp.zeros((NBp, 3 * V), jnp.float32).at[:NB].set(sd_cm)         # f32 (accuracy)
    pd_cm = posedirs.reshape(P, V, 3).transpose(0, 2, 1).reshape(P, 3 * V)  # (P, 3V)
    pd_cm = (jnp.zeros((Pp, 3 * V), jnp.float32).at[:P].set(pd_cm)
             .astype(jnp.bfloat16))                                         # bf16 (traffic)
    vt_cm = v_template.T.reshape(1, 3 * V).astype(jnp.float32)              # (1, 3V)

    J_template = J_regressor @ v_template                                   # (J, 3)
    J_shapedirs = jnp.einsum('jv,vkl->jkl', J_regressor, shapedirs)         # (J, 3, NB)
    w_t = jnp.asarray(weights).T                                            # (J, V)

    return dict(sd_cm=sd_cm, pd_cm=pd_cm, vt_cm=vt_cm,
                J_template=J_template, J_shapedirs=J_shapedirs, w_t=w_t,
                parents=parents, V=V, Jn=Jn, NB=NB, P=P, NBp=NBp, Pp=Pp)


# Permutation of the flattened 4x4 transform: keep only the 12 used entries,
# grouped as [col0(x), col1(y), col2(z), translation] for the (3,TV) apply.
_A12_PERM = np.array([0, 4, 8, 1, 5, 9, 2, 6, 10, 3, 7, 11], np.int32)


def body_model_forward(consts, betas, root_orient, pose_body, pose_hand, trans):
    """SMPL-type BodyModel.forward: returns (verts, Jtr, full_pose)."""
    B = betas.shape[0]
    V, Jn = consts['V'], consts['Jn']
    NB, P = consts['NB'], consts['P']
    NBp, Pp = consts['NBp'], consts['Pp']

    # ---- pose feature (model_type == 'smpl') ----
    full_pose = jnp.concatenate([root_orient, pose_body, pose_hand], axis=1)  # (B, 3*J)
    rot_mats = batch_rodrigues(full_pose.reshape(-1, 3)).reshape(B, Jn, 3, 3)
    pose_feature = (rot_mats[:, 1:] - jnp.eye(3, dtype=jnp.float32)).reshape(B, -1)

    # Zero-pad runtime coefficients to the padded K of the constant slabs.
    sc = jnp.zeros((B, NBp), jnp.float32).at[:, :NB].set(betas)
    pc = (jnp.zeros((B, Pp), jnp.float32).at[:, :P].set(pose_feature)
          .astype(jnp.bfloat16))

    # Kernel 1: split-precision fused shape+pose blend (HBM-streaming matmul).
    v_posed_cm = blend_pallas(sc, pc, consts['vt_cm'], consts['sd_cm'],
                              consts['pd_cm']).reshape(B, 3, V)              # (B, 3, V)

    # Joints via precomputed regressor contractions (tiny, f32, plain JAX).
    joints = consts['J_template'][None] + jnp.einsum(
        'bl,jkl->bjk', betas, consts['J_shapedirs'])                         # (B, J, 3)

    # Kinematic chain (sequential over 24 joints) in plain JAX.
    J_transformed, A = batch_rigid_transform(rot_mats, joints, consts['parents'])
    A_t12 = A.reshape(B, Jn, 16)[:, :, _A12_PERM].transpose(0, 2, 1)         # (B, 12, J)

    # Kernel 2: lane-dense linear-blend skinning -> (B, 3, V).
    verts_cm = skin_pallas(consts['w_t'], A_t12, v_posed_cm)

    # Layout flip + translation in the thin wrapper (fused by XLA).
    verts = verts_cm.transpose(0, 2, 1) + trans[:, None, :]                  # (B, V, 3)
    Jtr = J_transformed + trans[:, None, :]
    return verts, Jtr, full_pose


# ----------------------------------------------------------------------------
# Pure-JAX reference (mirrors the PyTorch lbs) for a correctness check
# ----------------------------------------------------------------------------

def lbs_reference(params, betas, root_orient, pose_body, pose_hand, trans):
    v_template = params['v_template']
    shapedirs = params['shapedirs']
    posedirs = params['posedirs']
    J_regressor = params['J_regressor']
    weights = params['weights']
    parents = params['parents']

    B = betas.shape[0]
    V = v_template.shape[0]
    Jn = J_regressor.shape[0]

    full_pose = jnp.concatenate([root_orient, pose_body, pose_hand], axis=1)
    v_shaped = v_template[None] + jnp.einsum('bl,vkl->bvk', betas, shapedirs)
    J = jnp.einsum('jv,bvk->bjk', J_regressor, v_shaped)
    rot_mats = batch_rodrigues(full_pose.reshape(-1, 3)).reshape(B, Jn, 3, 3)
    pose_feature = (rot_mats[:, 1:] - jnp.eye(3, dtype=jnp.float32)).reshape(B, -1)
    pose_offsets = jnp.matmul(pose_feature, posedirs).reshape(B, V, 3)
    v_posed = v_shaped + pose_offsets
    J_transformed, A = batch_rigid_transform(rot_mats, J, parents)
    T = jnp.einsum('vj,bjk->bvk', weights, A.reshape(B, Jn, 16)).reshape(B, V, 4, 4)
    v_h = jnp.concatenate([v_posed, jnp.ones((B, V, 1), jnp.float32)], axis=2)
    verts = jnp.einsum('bvij,bvj->bvi', T, v_h)[..., :3]
    return verts + trans[:, None, :], J_transformed + trans[:, None, :]


# ----------------------------------------------------------------------------
# Main
# ----------------------------------------------------------------------------

if __name__ == "__main__":
    B, V, Jn, NB = 2, 256, 24, 10                 # small SMPL-like model
    P = (Jn - 1) * 9                              # 207 pose-feature dims -> 'smpl'

    key = jax.random.PRNGKey(0)
    ks = jax.random.split(key, 12)

    params = {
        'v_template': 0.1 * jax.random.normal(ks[0], (V, 3), jnp.float32),
        'shapedirs': 0.01 * jax.random.normal(ks[1], (V, 3, NB), jnp.float32),
        # posedirs stored as in the module: posedirs.reshape(V*3, P).T -> (P, V*3)
        'posedirs': 0.01 * jax.random.normal(ks[2], (P, V * 3), jnp.float32),
        'J_regressor': jax.nn.softmax(
            2.0 * jax.random.normal(ks[3], (Jn, V), jnp.float32), axis=1),
        'weights': jax.nn.softmax(
            2.0 * jax.random.normal(ks[4], (V, Jn), jnp.float32), axis=1),
        'parents': np.array([-1, 0, 0, 0, 1, 2, 3, 4, 5, 6, 7, 8, 9, 9, 9,
                             12, 13, 14, 16, 17, 18, 19, 20, 21], np.int32),
        # faces buffer (res['f'] in the module): not used by the compute path
        'f': jax.random.randint(ks[5], (64, 3), 0, V, jnp.int32),
    }

    betas = 0.5 * jax.random.normal(ks[6], (B, NB), jnp.float32)
    root_orient = 0.2 * jax.random.normal(ks[7], (B, 3), jnp.float32)
    pose_body = 0.2 * jax.random.normal(ks[8], (B, 63), jnp.float32)
    pose_hand = 0.2 * jax.random.normal(ks[9], (B, 6), jnp.float32)
    trans = 0.1 * jax.random.normal(ks[10], (B, 3), jnp.float32)

    # Constants are prepared ONCE (cached parameters in production).
    consts = prepare_body_model_constants(params)
    jax.block_until_ready(consts['pd_cm'])

    verts, Jtr, full_pose = body_model_forward(
        consts, betas, root_orient, pose_body, pose_hand, trans)
    jax.block_until_ready((verts, Jtr, full_pose))

    assert verts.shape == (B, V, 3) and Jtr.shape == (B, Jn, 3)
    assert full_pose.shape == (B, 3 * Jn)

    # Sanity check against the pure-JAX reference of the PyTorch lbs.
    verts_ref, Jtr_ref = lbs_reference(
        params, betas, root_orient, pose_body, pose_hand, trans)
    np.testing.assert_allclose(np.asarray(verts), np.asarray(verts_ref),
                               rtol=2e-2, atol=2e-3)
    np.testing.assert_allclose(np.asarray(Jtr), np.asarray(Jtr_ref),
                               rtol=2e-2, atol=2e-3)

    print("KERNEL_OK")
</pallas_src>

<mosaic_0001>
module attributes {stable_mosaic.version = 11 : i64} {
  func.func @_blend_kernel(%arg0: i32, %arg1: memref<2x16xf32, #tpu.memory_space<vmem>>, %arg2: memref<2x208xbf16, #tpu.memory_space<vmem>>, %arg3: memref<1x384xf32, #tpu.memory_space<vmem>>, %arg4: memref<16x384xf32, #tpu.memory_space<vmem>>, %arg5: memref<208x384xbf16, #tpu.memory_space<vmem>>, %arg6: memref<2x384xf32, #tpu.memory_space<vmem>>) attributes {dimension_semantics = [#tpu.dimension_semantics<parallel>], iteration_bounds = array<i64: 2>, scalar_prefetch = 0 : i64, scratch_operands = 0 : i64, tpu.core_type = #tpu.core_type<tc>, window_params = [{pipeline_mode = #tpu.pipeline_mode<synchronous>, transform_indices = @transform_0, window_bounds = array<i64: 2, 16>}, {pipeline_mode = #tpu.pipeline_mode<synchronous>, transform_indices = @transform_1, window_bounds = array<i64: 2, 208>}, {transform_indices = @transform_2, window_bounds = array<i64: 1, 384>}, {transform_indices = @transform_3, window_bounds = array<i64: 16, 384>}, {transform_indices = @transform_4, window_bounds = array<i64: 208, 384>}, {transform_indices = @transform_5, window_bounds = array<i64: 2, 384>}]} {
    %c0 = arith.constant 0 : index
    %c0_0 = arith.constant 0 : index
    %0 = vector.load %arg1[%c0, %c0_0] : memref<2x16xf32, #tpu.memory_space<vmem>>, vector<2x16xf32>
    %c0_1 = arith.constant 0 : index
    %c0_2 = arith.constant 0 : index
    %1 = vector.load %arg4[%c0_1, %c0_2] : memref<16x384xf32, #tpu.memory_space<vmem>>, vector<16x384xf32>
    %cst = arith.constant dense<0.000000e+00> : vector<2x384xf32>
    %2 = tpu.matmul %0, %1, %cst {dimension_numbers = #tpu.dot_dimension_numbers<[1], [0], [0], [1], [0, 0, 1, 1], [], []>} : vector<2x16xf32>, vector<16x384xf32>, vector<2x384xf32> -> vector<2x384xf32>
    %c0_3 = arith.constant 0 : index
    %c0_4 = arith.constant 0 : index
    %3 = vector.load %arg2[%c0_3, %c0_4] : memref<2x208xbf16, #tpu.memory_space<vmem>>, vector<2x208xbf16>
    %c0_5 = arith.constant 0 : index
    %c0_6 = arith.constant 0 : index
    %4 = vector.load %arg5[%c0_5, %c0_6] : memref<208x384xbf16, #tpu.memory_space<vmem>>, vector<208x384xbf16>
    %cst_7 = arith.constant dense<0.000000e+00> : vector<2x384xf32>
    %5 = tpu.matmul %3, %4, %cst_7 {dimension_numbers = #tpu.dot_dimension_numbers<[1], [0], [0], [1], [0, 0, 1, 1], [], []>} : vector<2x208xbf16>, vector<208x384xbf16>, vector<2x384xf32> -> vector<2x384xf32>
    %c0_8 = arith.constant 0 : index
    %c0_9 = arith.constant 0 : index
    %6 = vector.load %arg3[%c0_8, %c0_9] : memref<1x384xf32, #tpu.memory_space<vmem>>, vector<1x384xf32>
    %7 = vector.broadcast %6 : vector<1x384xf32> to vector<2x384xf32>
    %8 = arith.addf %7, %2 : vector<2x384xf32>
    %9 = arith.addf %8, %5 : vector<2x384xf32>
    %c0_10 = arith.constant 0 : index
    %c0_11 = arith.constant 0 : index
    %10 = vector.load %arg6[%c0_10, %c0_11] : memref<2x384xf32, #tpu.memory_space<vmem>>, vector<2x384xf32>
    tpu.vector_store %arg6[%c0_10, %c0_11], %9 {strides = array<i32>} : memref<2x384xf32, #tpu.memory_space<vmem>>, vector<2x384xf32>,
    return
  }
  func.func @transform_0(%arg0: i32) -> (i32, i32) {
    %c0_i32 = arith.constant 0 : i32
    %c0_i32_0 = arith.constant 0 : i32
    %c0_i32_1 = arith.constant 0 : i32
    return %c0_i32, %c0_i32_0 : i32, i32
  }
  func.func @transform_1(%arg0: i32) -> (i32, i32) {
    %c0_i32 = arith.constant 0 : i32
    %c0_i32_0 = arith.constant 0 : i32
    %c0_i32_1 = arith.constant 0 : i32
    return %c0_i32, %c0_i32_0 : i32, i32
  }
  func.func @transform_2(%arg0: i32) -> (i32, i32) {
    %c0_i32 = arith.constant 0 : i32
    %c0_i32_0 = arith.constant 0 : i32
    return %c0_i32, %arg0 : i32, i32
  }
  func.func @transform_3(%arg0: i32) -> (i32, i32) {
    %c0_i32 = arith.constant 0 : i32
    %c0_i32_0 = arith.constant 0 : i32
    return %c0_i32, %arg0 : i32, i32
  }
  func.func @transform_4(%arg0: i32) -> (i32, i32) {
    %c0_i32 = arith.constant 0 : i32
    %c0_i32_0 = arith.constant 0 : i32
    return %c0_i32, %arg0 : i32, i32
  }
  func.func @transform_5(%arg0: i32) -> (i32, i32) {
    %c0_i32 = arith.constant 0 : i32
    %c0_i32_0 = arith.constant 0 : i32
    return %c0_i32, %arg0 : i32, i32
  }
}

</mosaic_0001>

<bundles_post_ra>
// kernel: tpu_custom_call.1
= control target key start
LH: loop header
LB: loop body
LE: loop exit
PB: predicated region body
PF: predicated region fallthrough
CT: control target
= control target key end

     0   :  { %s1812_s0 = inlined_call_operand.hbm [shape: f32[2,16], index: 0, kind: input, shape index: {}]   ;;  %s1813_s1 = inlined_call_operand.hbm [shape: bf16[2,208], index: 1, kind: input, shape index: {}]   ;;  %s1814_s2 = inlined_call_operand.vmem [shape: f32[1,768], index: 2, kind: input, shape index: {}]   ;;  %s1815_s3 = inlined_call_operand.hbm [shape: f32[16,768], index: 3, kind: input, shape index: {}]   ;;  %s1816_s4 = inlined_call_operand.hbm [shape: bf16[208,768], index: 4, kind: input, shape index: {}]   ;;  %s1817_s5 = inlined_call_operand.hbm [shape: f32[2,768], index: 5, kind: output, shape index: {}]  }
   0x1   :  { %1830 = sst [smem:[#allocation17_spill]] %s1812_s0 }
   0x2   :  { %1831 = sst [smem:[#allocation18_spill]] %s1815_s3 }
   0x3   :  { %10 = vsyncpa [#allocation3], 0 }
   0x4   :  { %11 = vsyncpa [#allocation6], 0 }
   0x5   :  { %12 = vsyncpa [#allocation4], 0 }
   0x6   :  { %14 = vsyncpa [#allocation4 + $0x1], 0  ;;  %s1480_s18 = smov 0   ;;  %s1482_s19 = smov 0  }
   0x7   :  { %s1484_s20 = smov 0   ;;  %s1486_s21 = smov 0  }
   0x8 LB: > { %s1501_s22 = sadd.s32 4294967295, %s1432_s21   ;;  %s1025_s23 = sadd.s32 4294967294, %s1432_s21   ;;  %s1432_s21 = sphi %s1486_s21, %s1862_s21   ;;  %s1428_s20 = sphi %s1484_s20, %s1866_s20   ;;  %s1424_s19 = sphi %s1482_s19, %s1865_s19   ;;  %s1420_s18 = sphi %s1480_s18, %s1864_s18  }
   0x9   : > { %s1505_s24 = sadd.s32 1, %s1432_s21   ;;  %s95_s25 = sadd.s32 1, %s1428_s20 }
   0xa   : > { %1832 = sst [smem:[#allocation14_spill]] %s1505_s24  ;;  %s92_s26 = ssub.s32 %s1432_s21, %s1505_s24 }
   0xb   : > { %p102_p0 = scmp.ne.s32.totalorder %s1428_s20, %s1424_s19  ;;  %p93_p1 = scmp.eq.s32.totalorder %s92_s26, 0 }
   0xc   : > { %p103_p2 = scmp.eq.s32.totalorder %s1432_s21, 0  ;;  %p108_p3 = scmp.ne.s32.totalorder %s1424_s19, %s1420_s18 }
   0xd   : > { %p1818_p4 = scmp.eq.s32.totalorder %s1501_s22, 0  ;;  %p158_p7 = scmp.eq.s32.totalorder %s1501_s22, 1 }
   0xe   : > { %s1517_s27 = scalar_select %p93_p1, %s1428_s20, %s95_s25  }
   0xf   : > { %p1519_p5 = por %p103_p2, %p102_p0  ;;  %p1525_p6 = por %p1818_p4, %p108_p3 }
  0x10   : > { %1833 = sst [smem:[#allocation15_spill]] %s1517_s27  ;;  %p164_p8 = scmp.eq.s32.totalorder %s1025_s23, 1 }
  0x11   : > { %s1835_s29 = scalar_select %p1525_p6, 1, 0 }
  0x12   : > { %p1026_p9 = scmp.ge.s32.totalorder %s1432_s21, 1  ;;  %p171_p10 = scmp.lt.s32.totalorder %s1432_s21, 3 }
  0x13   : > { %p1532_p11 = por %p158_p7, %p102_p0  ;;  %p1536_p12 = por %p164_p8, %p108_p3 }
  0x14   : > { %p1540_p13 = pnand %p1026_p9, %p171_p10  ;;  %s1434_s8 = smov [#allocation2]  }
  0x15   : > { %s1836_s30 = scalar_select %p1532_p11, 1, 0 }
  0x16   : > { %s1837_s6 = scalar_select %p1536_p12, 1, 0 }
  0x17   : > { %s1839_s7 = scalar_select %p1540_p13, 1, 0 }
  0x18   : > { %1838 = sst [smem:[#allocation16_spill]] %s1837_s6  ;;  %p1121_p2 = pneg %p1540_p13 }
  0x19   : > { %s184_s9 = sshll.u32 %s1434_s8, 4  ;;  %p1141_p4 = scmp.lt.s32.totalorder %s1432_s21, 2  ;;  %s185_s9 = int_to_ptr.vmem [resolvable:$true] %s184_s9 }
  0x1a   : > { %p1840_p0 = scmp.eq.s32.totalorder %s1501_s22, 0  ;;  %s214_s11 = sand.u32 1, %s1432_s21  }
  0x1b   : > { %p1557_p3 = pnand %p1141_p4, %p1519_p5  ;;  %s1823_s13 = sand.u32 1, %s1428_s20  }
  0x1c   : > { %p1550_p7 = pnand %p1121_p2, %p1840_p0  ;;  %s1843_s0 = sld [smem:[#allocation17_spill]] }
  0x1d   : > { %s1842_s12 = scalar_select %p1557_p3, 1, 0 }
  0x1e   : > { %p1824_p9 = pneg %p1550_p7 }
  0x22   : > { %s1242_s16 = scalar_lea.hbm %s1843_s0, 32 }
  0x23   : > { %p1243_p8 = scmp.ne.s32.totalorder %s1843_s0, %s1242_s16  ;;  %p1249_p4 = scmp.lt.u32.totalorder %s1242_s16, %s1843_s0 }
  0x25   : > { %p1245_p10 = pnand %p1824_p9, %p1243_p8 }
  0x27   : > { %p1246_p2 = pneg %p1245_p10 }
  0x29   : > { %p1251_p5 = pnand %p1249_p4, %p1246_p2 }
  0x2b   : > { %1254 = shalt.err (!%p1251_p5)
}
  0x2c   : > { %s1255_s28 = scalar_lea.vmem %s185_s9, 32  ;;  %p1263_p11 = scmp.lt.s32.totalorder %s185_s9, %s185_s9 }
  0x2d   : > { %p1256_p0 = scmp.ne.s32.totalorder %s185_s9, %s1255_s28  ;;  %p1264_p6 = scmp.lt.s32.totalorder %s1255_s28, %s1255_s28 }
  0x2f   : > { %p1258_p1 = pnand %p1256_p0, %p1824_p9  ;;  %p1265_p13 = por %p1264_p6, %p1263_p11 }
  0x31   : > { %p1259_p12 = pneg %p1258_p1 }
  0x33   : > { %p1266_p3 = pnand %p1265_p13, %p1259_p12 }
  0x35   : > { %1269 = shalt.err (!%p1266_p3)
}
  0x36   : > { %1124 = dma.hbm_to_vmem [thread:$0]  (!%p1550_p7), %s1843_s0, 32, %s185_s9, [#allocation3]  }
  0x37   : > { %s1102_s15 = smul.u32 48, %s1823_s13  ;;  %s1844_s3 = sld [smem:[#allocation18_spill]] }
  0x38   : > { %s1082_s16 = smul.u32 384, %s1432_s21  ;;  %s1594_s8 = scalar_lea.sflag [#allocation3], %s214_s11 }
  0x39   : > { %s218_s26 = scalar_lea.vmem [#allocation7], %s1102_s15  ;;  %p1845_p11 = scmp.ne.s32.totalorder %s1842_s12, 0 }
  0x3a   : > { %s225_s28 = sshll.u32 %s218_s26, 4  ;;  %s1592_s28 = int_to_ptr.vmem [resolvable:$true] %s225_s28 }
  0x3b   : > { %p1828_p12 = pneg %p1845_p11 }
  0x3d   : > { %s1590_s25 = scalar_lea.hbm %s1844_s3, %s1082_s16  ;;  %s1275_s17 = scalar_lea.hbm %s1844_s3, 1536 }
  0x3e   : > { %s1270_s14 = scalar_lea.hbm %s1590_s25, 768  ;;  %p1276_p3 = scmp.lt.u32.totalorder %s1590_s25, %s1844_s3 }
  0x3f   : > { %p1271_p6 = scmp.ne.s32.totalorder %s1590_s25, %s1270_s14  ;;  %p1277_p8 = scmp.lt.u32.totalorder %s1275_s17, %s1270_s14 }
  0x40   : > { %p1279_p2 = scmp.lt.u32.totalorder %s1270_s14, %s1590_s25 }
  0x41   : > { %p1273_p13 = pnand %p1828_p12, %p1271_p6  ;;  %p1278_p10 = por %p1277_p8, %p1276_p3 }
  0x43   : > { %p1274_p1 = pneg %p1273_p13  ;;  %p1280_p4 = por %p1279_p2, %p1278_p10 }
  0x45   : > { %p1281_p5 = pnand %p1280_p4, %p1274_p1 }
  0x47   : > { %1284 = shalt.err (!%p1281_p5)
}
  0x48   : > { %s1285_s11 = scalar_lea.vmem %s1592_s28, 768  ;;  %s1435_s15 = smov [#allocation7]  }
  0x49   : > { %p1286_p0 = scmp.ne.s32.totalorder %s1592_s28, %s1285_s11  ;;  %s1290_s26 = sshll.u32 %s1435_s15, 4  ;;  %s1291_s26 = int_to_ptr.vmem [resolvable:$false] %s1290_s26 }
  0x4a   : > { %s1292_s13 = scalar_lea.vmem %s1291_s26, 1536  ;;  %p1293_p9 = scmp.lt.s32.totalorder %s1592_s28, %s1291_s26 }
  0x4b   : > { %p1288_p6 = pnand %p1286_p0, %p1828_p12  ;;  %p1294_p3 = scmp.lt.s32.totalorder %s1292_s13, %s1285_s11 }
  0x4d   : > { %p1289_p13 = pneg %p1288_p6  ;;  %p1295_p8 = por %p1294_p3, %p1293_p9 }
  0x4f   : > { %p1296_p10 = pnand %p1295_p8, %p1289_p13 }
  0x51   : > { %1299 = shalt.err (!%p1296_p10)
}
  0x52   : > { %s1436_s14 = smov 768   ;;  %s1437_s9 = smov 384  }
  0x53   : > { %s1438_s16 = smov 24   ;;  %s1846_s17 = sand.u32 1, %s1428_s20  }
  0x54   : > { %1131 = dma.hbm_to_vmem [thread:$0]  (!%p1845_p11), %s1590_s25, 768, %s1592_s28, %s1594_s8, %s1436_s14, %s1437_s9, %s1438_s16  }
  0x55   : > { %s1103_s23 = smul.u32 312, %s1846_s17  ;;  %s1439_s15 = smov [#allocation5]  }
  0x56   : > { %s195_s11 = sshll.u32 %s1439_s15, 4  ;;  %s1083_s26 = smul.u32 192, %s1432_s21  ;;  %s196_s11 = int_to_ptr.vmem [resolvable:$true] %s195_s11 }
  0x57   : > { %s1300_s3 = scalar_lea.hbm %s1813_s1, 32  ;;  %p1847_p1 = pneg %p1550_p7 }
  0x58   : > { %p1301_p9 = scmp.ne.s32.totalorder %s1813_s1, %s1300_s3  ;;  %p1307_p5 = scmp.lt.u32.totalorder %s1300_s3, %s1813_s1 }
  0x5a   : > { %p1303_p2 = pnand %p1301_p9, %p1847_p1 }
  0x5c   : > { %p1304_p4 = pneg %p1303_p2 }
  0x5e   : > { %p1309_p0 = pnand %p1307_p5, %p1304_p4 }
  0x60   : > { %1312 = shalt.err (!%p1309_p0)
}
  0x61   : > { %s1313_s28 = scalar_lea.vmem %s196_s11, 32  ;;  %p1848_p13 = pmov %p1847_p1 }
  0x62   : > { %p1314_p6 = scmp.ne.s32.totalorder %s196_s11, %s1313_s28  ;;  %p1321_p10 = scmp.lt.s32.totalorder %s196_s11, %s196_s11 }
  0x63   : > { %p1322_p12 = scmp.lt.s32.totalorder %s1313_s28, %s1313_s28 }
  0x64   : > { %p1316_p3 = pnand %p1314_p6, %p1848_p13 }
  0x65   : > { %p1323_p11 = por %p1322_p12, %p1321_p10 }
  0x66   : > { %p1317_p8 = pneg %p1316_p3 }
  0x68   : > { %p1324_p1 = pnand %p1323_p11, %p1317_p8 }
  0x6a   : > { %1327 = shalt.err (!%p1324_p1)
}
  0x6b   : > { %1127 = dma.hbm_to_vmem [thread:$0]  (!%p1550_p7), %s1813_s1, 32, %s196_s11, [#allocation6]  }
  0x6c   : > { %s1649_s6 = scalar_lea.hbm %s1816_s4, %s1083_s26  ;;  %s239_s14 = scalar_lea.vmem [#allocation8], %s1103_s23 }
  0x6d   : > { %s246_s16 = sshll.u32 %s239_s14, 4  ;;  %s1328_s17 = scalar_lea.hbm %s1649_s6, 4992  ;;  %s1651_s16 = int_to_ptr.vmem [resolvable:$true] %s246_s16 }
  0x6e   : > { %p1329_p11 = scmp.ne.s32.totalorder %s1649_s6, %s1328_s17  ;;  %p1849_p12 = scmp.ne.s32.totalorder %s1842_s12, 0 }
  0x6f   : > { %s1333_s11 = scalar_lea.hbm %s1816_s4, 9984  ;;  %p1334_p7 = scmp.lt.u32.totalorder %s1649_s6, %s1816_s4 }
  0x70   : > { %p1850_p9 = pneg %p1849_p12  ;;  %p1335_p5 = scmp.lt.u32.totalorder %s1333_s11, %s1328_s17 }
  0x71   : > { %p1337_p6 = scmp.lt.u32.totalorder %s1328_s17, %s1649_s6 }
  0x72   : > { %p1331_p2 = pnand %p1329_p11, %p1850_p9  ;;  %p1336_p0 = por %p1335_p5, %p1334_p7 }
  0x74   : > { %p1332_p4 = pneg %p1331_p2  ;;  %p1338_p13 = por %p1337_p6, %p1336_p0 }
  0x76   : > { %p1339_p3 = pnand %p1338_p13, %p1332_p4 }
  0x78   : > { %1342 = shalt.err (!%p1339_p3)
}
  0x79   : > { %s1343_s23 = scalar_lea.vmem %s1651_s16, 4992  ;;  %p1851_p10 = pmov %p1850_p9 }
  0x7a   : > { %p1344_p8 = scmp.ne.s32.totalorder %s1651_s16, %s1343_s23  ;;  %s1440_s25 = smov [#allocation8]  }
  0x7b   : > { %s1348_s28 = sshll.u32 %s1440_s25, 4  ;;  %s1349_s28 = int_to_ptr.vmem [resolvable:$false] %s1348_s28 }
  0x7c   : > { %p1346_p1 = pnand %p1344_p8, %p1851_p10  ;;  %s1350_s0 = scalar_lea.vmem %s1349_s28, 9984 }
  0x7d   : > { %p1351_p9 = scmp.lt.s32.totalorder %s1651_s16, %s1349_s28  ;;  %p1352_p2 = scmp.lt.s32.totalorder %s1350_s0, %s1343_s23 }
  0x7e   : > { %p1347_p11 = pneg %p1346_p1 }
  0x7f   : > { %p1353_p7 = por %p1352_p2, %p1351_p9 }
  0x81   : > { %p1354_p5 = pnand %p1353_p7, %p1347_p11 }
  0x83   : > { %1357 = shalt.err (!%p1354_p5)
}
  0x84   : > { %s1441_s24 = smov 192   ;;  %s1442_s3 = smov 12  }
  0x85   : > { %1134 = dma.hbm_to_vmem [thread:$0]  (!%p1849_p12), %s1649_s6, 4992, %s1651_s16, %s1594_s8, %s1437_s9, %s1441_s24, %s1442_s3  }
  0x86   : > { %p1852_p4 = scmp.ne.s32.totalorder %s1839_s7, 0 }
  0x87   : > { %p1853_p0 = scmp.eq.s32.totalorder (!%p1852_p4), %s1501_s22, 0 }
  0x88   : > { %258 = sbr.rel (%p1852_p4) target bundleno = 447 (0x1bf), region = 40 }
  0x8f   : > { %1403 = dma.done.wait (%p1853_p0), [#allocation3], 32   ;;  %p1854_p6 = pmov %p1853_p0 }
  0x90   : > { %p1855_p13 = pmov %p1853_p0 }
  0x91   : > { %1405 = vsyncadd (%p1854_p6), [#allocation3], 4294967264 }
  0x92   : > { %1407 = dma.done.wait (%p1855_p13), [#allocation6], 32   ;;  %p1856_p3 = pmov %p1853_p0 }
  0x93   : > { %s268_s12 = sand.u32 1, %s1501_s22   ;;  %s1690_s8 = sand.u32 1, %s1424_s19  }
  0x94   : > { %1409 = vsyncadd (%p1856_p3), [#allocation6], 4294967264  ;;  %s1104_s7 = smul.u32 48, %s1690_s8  ;;  %s269_s9 = scalar_lea.sflag [#allocation3], %s268_s12 }
  0x95   : > { %p1857_p12 = scmp.ne.s32.totalorder %s1835_s29, 0 }
  0x96   : > { %s272_s27 = scalar_lea.vmem [#allocation7], %s1104_s7 }
  0x97   : > { %1411 = dma.done.wait (%p1857_p12), %s269_s9, 5760  }
  0x98   : > { %1413 = vsyncadd (%p1857_p12), %s269_s9, 4294961536  ;;  %v1443_v0 = vmov 0.0|0.0   ;;  %v1444_v1 = vmov 0.0   ;;  %vm1445_vm0 = vmmov 0   ;;  %s1105_s6 = smul.u32 312, %s1690_s8  ;;  %v328_v2 = vld [vmem:[%s272_s27 + $0x8] sm:$0xff]  ;;  %v543_v33 = vlaneseq }
  0x99   : > { %1099 = vmatprep.subr.bf16.mxu1 %v1443_v0  ;;  %401 = vmatprep.mubr.f32.mxu0 %v1444_v1  ;;  %v331_v3 = vld [vmem:[%s272_s27 + $0x20] sm:$0xff]  ;;  %v329_v4 = vld [vmem:[%s272_s27 + $0x10] sm:$0xff]  ;;  %v332_v6 = vld [vmem:[%s272_s27 + $0x28] sm:$0xff]  ;;  %vm333_vm1 = vcmask 130048   ;;  %v1446_v15 = vmov 0   ;;  %vm763_vm2 = vcmask 654336  }
  0x9a   : > { %1092 = vmatprep.mubr.msk.f32.mxu1 %vm1445_vm0, %v1444_v1  ;;  %v1095_v5 = vpack.c.bf16 %v331_v3, %v328_v2  ;;  %v327_v7 = vld [vmem:[%s272_s27] sm:$0xff]  ;;  %v330_v8 = vld [vmem:[%s272_s27 + $0x18] sm:$0xff]  ;;  %v1100_v9 = vpack.c.bf16 %v332_v6, %v329_v4  ;;  %s1698_s29 = scalar_lea.vmem [#allocation8], %s1105_s6  ;;  %v1447_v31 = vmov 1966171168   ;;  %v1727_v38 = vshrl.u32 %v543_v33, 7 }
  0x9b   : > { %v1097_v10 = vpack.c.bf16 %v330_v8, %v327_v7  ;;  %v326_v11 = vld [vmem:[#allocation2] sm:$0x3]  ;;  %v1190_v12 = vld [vmem:[%s1698_s29] ss:$12 sps:$4 sm:$0xff]   ;;  %v1193_v14 = vld [vmem:[%s1698_s29 + $0x8] ss:$12 sps:$4 sm:$0xff]   ;;  %v541_v32 = vunpack.c.l.s4 %v1447_v31 }
  0x9c   : > { %1096 = vmatprep.subr.bf16.mxu0 %v1095_v5  ;;  %v1192_v13 = vld [vmem:[%s1698_s29 + $0x4] ss:$12 sps:$4 sm:$0xff]   ;;  %1101 = vmatpush3.bf16.msra.mxu1 %v1100_v9  ;;  %v1196_v16 = vld [vmem:[%s1698_s29 + $0x1c] ss:$12 sps:$4 sm:$0xff]   ;;  %v1197_v18 = vld [vmem:[%s1698_s29 + $0x20] ss:$12 sps:$4 sm:$0xff]  }
  0x9d   : > { %1098 = vmatpush1.bf16.msra.mxu0 %v1097_v10  ;;  %808 = vmatprep.subr.bf16.mxu1 %v1446_v15  ;;  %v1194_v17 = vld [vmem:[%s1698_s29 + $0x18] ss:$12 sps:$4 sm:$0xff]   ;;  %v1200_v19 = vld [vmem:[%s1698_s29 + $0x34] ss:$12 sps:$4 sm:$0xff]   ;;  %v1198_v20 = vld [vmem:[%s1698_s29 + $0x30] ss:$12 sps:$4 sm:$0xff]   ;;  %v542_v37 = vunpack.c.0.s8 %v541_v32 }
  0x9e   : > { %767 = vmatprep.subr.bf16.mxu0 %v1192_v13  ;;  %v1201_v21 = vld [vmem:[%s1698_s29 + $0x38] ss:$12 sps:$4 sm:$0xff]   ;;  %v1202_v23 = vld [vmem:[%s1698_s29 + $0x48] ss:$12 sps:$4 sm:$0xff]   ;;  %v1205_v24 = vld [vmem:[%s1698_s29 + $0x50] ss:$12 sps:$4 sm:$0xff]  }
  0x9f   : > { %1093 = vmatmul.mubr.msk.f32.vlgmr.msra.gmra.mrb[0].mxu1 %vm333_vm1, %v326_v11  ;;  %v1204_v22 = vld [vmem:[%s1698_s29 + $0x4c] ss:$12 sps:$4 sm:$0xff]   ;;  %v1208_v25 = vld [vmem:[%s1698_s29 + $0x64] ss:$12 sps:$4 sm:$0xff]   ;;  %v1209_v27 = vld [vmem:[%s1698_s29 + $0x68] ss:$12 sps:$4 sm:$0xff]   ;;  %v545_v42 = vsub.s32 %v542_v37, %v1727_v38 }
  0xa0   : > { %1035 = vmatmul.mubr.msk.f32.vlgmr.msra.gmra.mrb[0].mxu0 %vm333_vm1, %v326_v11  ;;  %809 = vmatpush1.bf16.msra.mxu1 %v1193_v14  ;;  %v1206_v26 = vld [vmem:[%s1698_s29 + $0x60] ss:$12 sps:$4 sm:$0xff]   ;;  %v1212_v28 = vld [vmem:[%s1698_s29 + $0x7c] ss:$12 sps:$4 sm:$0xff]   ;;  %v1210_v29 = vld [vmem:[%s1698_s29 + $0x78] ss:$12 sps:$4 sm:$0xff]  }
  0xa1   : > { %768 = vmatpush1.bf16.msra.mxu0 %v1190_v12  ;;  %810 = vmatprep.subr.bf16.mxu1 %v1446_v15  ;;  %v1213_v30 = vld [vmem:[%s1698_s29 + $0x80] ss:$12 sps:$4 sm:$0xff]   ;;  %v1214_v35 = vld [vmem:[%s1698_s29 + $0x90] ss:$12 sps:$4 sm:$0xff]   ;;  %v1217_v36 = vld [vmem:[%s1698_s29 + $0x98] ss:$12 sps:$4 sm:$0xff]  }
  0xa2   : > { %769 = vmatprep.subr.bf16.mxu0 %v1196_v16  ;;  %v1216_v34 = vld [vmem:[%s1698_s29 + $0x94] ss:$12 sps:$4 sm:$0xff]   ;;  %v1220_v39 = vld [vmem:[%s1698_s29 + $0xac] ss:$12 sps:$4 sm:$0xff]   ;;  %v1221_v41 = vld [vmem:[%s1698_s29 + $0xb0] ss:$12 sps:$4 sm:$0xff]  }
  0xa3   : > { %v1218_v40 = vld [vmem:[%s1698_s29 + $0xa8] ss:$12 sps:$4 sm:$0xff]   ;;  %v1224_v43 = vld [vmem:[%s1698_s29 + $0xc4] ss:$12 sps:$4 sm:$0xff]   ;;  %v1222_v46 = vld [vmem:[%s1698_s29 + $0xc0] ss:$12 sps:$4 sm:$0xff]  }
  0xa4   : > { %811 = vmatpush1.bf16.msra.mxu1 %v1197_v18  ;;  %v1037_v44 = vld.sshfl [vmem:[#allocation5] sm:$0x11 pattern:$0x75316420]  ;;  %v1225_v47 = vld [vmem:[%s1698_s29 + $0xc8] ss:$12 sps:$4 sm:$0xff]  }
  0xa5   : > { %770 = vmatpush1.bf16.msra.mxu0 %v1194_v17  ;;  %812 = vmatprep.subr.bf16.mxu1 %v1446_v15  ;;  %v539_v45 = vcombine.high %v1037_v44, %v1037_v44  ;;  %v1228_v49 = vld [vmem:[%s1698_s29 + $0xdc] ss:$12 sps:$4 sm:$0xff]   ;;  %v1226_v50 = vld [vmem:[%s1698_s29 + $0xd8] ss:$12 sps:$4 sm:$0xff]   ;;  %v1229_v51 = vld [vmem:[%s1698_s29 + $0xe0] ss:$12 sps:$4 sm:$0xff]   ;;  %v546_v61 = vrot.slane %v1037_v44, %v545_v42 }
  0xa6   : > { %771 = vmatprep.subr.bf16.mxu0 %v1200_v19  ;;  %v1232_v52 = vld [vmem:[%s1698_s29 + $0xf4] ss:$12 sps:$4 sm:$0xff]   ;;  %v1230_v53 = vld [vmem:[%s1698_s29 + $0xf0] ss:$12 sps:$4 sm:$0xff]   ;;  %v1233_v54 = vld [vmem:[%s1698_s29 + $0xf8] ss:$12 sps:$4 sm:$0xff]  }
  0xa7   : > { %v553_v48 = vrot.slane %v539_v45, %v545_v42  ;;  %v1236_v55 = vld [vmem:[%s1698_s29 + $0x10c] ss:$12 sps:$4 sm:$0xff]   ;;  %v1234_v56 = vld [vmem:[%s1698_s29 + $0x108] ss:$12 sps:$4 sm:$0xff]   ;;  %v1237_v57 = vld [vmem:[%s1698_s29 + $0x110] ss:$12 sps:$4 sm:$0xff]  }
  0xa8   : > { %813 = vmatpush1.bf16.msra.mxu1 %v1201_v21  ;;  %v1240_v58 = vld [vmem:[%s1698_s29 + $0x124] ss:$12 sps:$4 sm:$0xff]   ;;  %v1238_v59 = vld [vmem:[%s1698_s29 + $0x120] ss:$12 sps:$4 sm:$0xff]   ;;  %v1241_v60 = vld [vmem:[%s1698_s29 + $0x128] ss:$12 sps:$4 sm:$0xff]  }
  0xa9   : > { %772 = vmatpush1.bf16.msra.mxu0 %v1198_v20  ;;  %814 = vmatprep.subr.bf16.mxu1 %v1446_v15  ;;  %s317_s14 = smul.u32 3, %s1501_s22  ;;  %v852_v2 = vsub.s32 0, %v1727_v38  ;;  %v860_v3 = vsub.s32 2, %v1727_v38  ;;  %v856_v5 = vsub.s32 1, %v1727_v38  ;;  %v1448_v6 = vmov 1983009808  }
  0xaa   : > { %773 = vmatprep.subr.bf16.mxu0 %v1204_v22  ;;  %1078 = vmatprep.mubr.msk.bf16.mxu1 %vm763_vm2, %v553_v48  ;;  %v876_v7 = vunpack.c.l.s4 %v1448_v6  ;;  %s1106_s15 = smul.u32 6, %s1690_s8  ;;  %s893_s0 = scalar_lea.sflag [#allocation4], %s1690_s8 }
  0xab   : > { %1077 = vmatprep.mubr.msk.bf16.mxu0 %vm763_vm2, %v553_v48  ;;  %p318_p8 = scmp.lt.s32.totalorder %s317_s14, 5  ;;  %s1084_s11 = smul.u32 96, %s1501_s22 }
  0xac   : > { %815 = vmatpush1.bf16.msra.mxu1 %v1205_v24  ;;  %v877_v11 = vunpack.c.0.s8 %v876_v7  ;;  %s316_s26 = scalar_lea.vmem [#allocation9], %s1106_s15  ;;  %p1858_p1 = scmp.ne.s32.totalorder %s1836_s30, 0 }
  0xad   : > { %774 = vmatpush1.bf16.msra.mxu0 %v1202_v23  ;;  %816 = vmatprep.subr.bf16.mxu1 %v1446_v15  ;;  %s1868_s14 = smov (!%p318_p8, %s317_s14), 5  ;;  %s907_s13 = sshll.u32 %s316_s26, 4  ;;  %s1770_s13 = int_to_ptr.vmem [resolvable:$true] %s907_s13 }
  0xae   : > { %775 = vmatprep.subr.bf16.mxu0 %v1208_v25  ;;  %s320_s10 = scalar_lea.vmem %s1814_s2, %s1868_s14  ;;  %v880_v21 = vsub.s32 %v877_v11, %v1727_v38  ;;  %s1768_s28 = scalar_lea.hbm %s1817_s5, %s1084_s11 }
  0xaf   : > { %v848_v4 = vld [vmem:[%s320_s10] sm:$0x7]  ;;  %s1358_s24 = scalar_lea.vmem %s1770_s13, 96  ;;  %s1449_s22 = smov [#allocation9]  }
  0xb0   : > { %817 = vmatpush1.bf16.msra.mxu1 %v1209_v27  ;;  %v853_v8 = vrot.slane %v848_v4, %v852_v2  ;;  %v861_v9 = vrot.slane %v848_v4, %v860_v3  ;;  %v857_v10 = vrot.slane %v848_v4, %v856_v5  ;;  %p1359_p10 = scmp.ne.s32.totalorder %s1770_s13, %s1358_s24  ;;  %s1362_s3 = sshll.u32 %s1449_s22, 4  ;;  %s1363_s3 = int_to_ptr.vmem [resolvable:$false] %s1362_s3 }
  0xb1   : > { %776 = vmatpush1.bf16.msra.mxu0 %v1206_v26  ;;  %818 = vmatprep.subr.bf16.mxu1 %v1446_v15  ;;  %s1364_s12 = scalar_lea.vmem %s1363_s3, 192  ;;  %p1365_p2 = scmp.lt.s32.totalorder %s1770_s13, %s1363_s3 }
  0xb2   : > { %777 = vmatprep.subr.bf16.mxu0 %v1212_v28  ;;  %p1360_p11 = pnand %p1359_p10, %p1858_p1  ;;  %p1366_p7 = scmp.lt.s32.totalorder %s1364_s12, %s1358_s24 }
  0xb4   : > { %819 = vmatpush1.bf16.msra.mxu1 %v1213_v30  ;;  %p1361_p9 = pneg %p1360_p11  ;;  %p1367_p5 = por %p1366_p7, %p1365_p2 }
  0xb5   : > { %778 = vmatpush1.bf16.msra.mxu0 %v1210_v29  ;;  %820 = vmatprep.subr.bf16.mxu1 %v1446_v15 }
  0xb6   : > { %779 = vmatprep.subr.bf16.mxu0 %v1216_v34  ;;  %p1368_p4 = pnand %p1367_p5, %p1361_p9 }
  0xb8   : > { %821 = vmatpush1.bf16.msra.mxu1 %v1217_v36 }
  0xb9   : > { %780 = vmatpush1.bf16.msra.mxu0 %v1214_v35  ;;  %822 = vmatprep.subr.bf16.mxu1 %v1446_v15 }
  0xba   : > { %781 = vmatprep.subr.bf16.mxu0 %v1220_v39 }
  0xbc   : > { %823 = vmatpush1.bf16.msra.mxu1 %v1221_v41 }
  0xbd   : > { %782 = vmatpush1.bf16.msra.mxu0 %v1218_v40  ;;  %824 = vmatprep.subr.bf16.mxu1 %v1446_v15 }
  0xbe   : > { %783 = vmatprep.subr.bf16.mxu0 %v1224_v43 }
  0xc0   : > { %825 = vmatpush1.bf16.msra.mxu1 %v1225_v47 }
  0xc1   : > { %784 = vmatpush1.bf16.msra.mxu0 %v1222_v46  ;;  %826 = vmatprep.subr.bf16.mxu1 %v1446_v15 }
  0xc2   : > { %785 = vmatprep.subr.bf16.mxu0 %v1228_v49 }
  0xc4   : > { %827 = vmatpush1.bf16.msra.mxu1 %v1229_v51 }
  0xc5   : > { %786 = vmatpush1.bf16.msra.mxu0 %v1226_v50  ;;  %828 = vmatprep.subr.bf16.mxu1 %v1446_v15 }
  0xc6   : > { %787 = vmatprep.subr.bf16.mxu0 %v1232_v52 }
  0xc8   : > { %829 = vmatpush1.bf16.msra.mxu1 %v1233_v54 }
  0xc9   : > { %788 = vmatpush1.bf16.msra.mxu0 %v1230_v53  ;;  %830 = vmatprep.subr.bf16.mxu1 %v1446_v15 }
  0xca   : > { %789 = vmatprep.subr.bf16.mxu0 %v1236_v55 }
  0xcc   : > { %831 = vmatpush1.bf16.msra.mxu1 %v1237_v57 }
  0xcd   : > { %790 = vmatpush1.bf16.msra.mxu0 %v1234_v56  ;;  %832 = vmatprep.subr.bf16.mxu1 %v1446_v15 }
  0xce   : > { %791 = vmatprep.subr.bf16.mxu0 %v1240_v58 }
  0xd0   : > { %833 = vmatpush1.bf16.msra.mxu1 %v1241_v60 }
  0xd1   : > { %792 = vmatpush1.bf16.msra.mxu0 %v1238_v59 }
  0xd3   : > { %841 = vmatmul.mubr.bf16.vlgmr.msra.gmra.mrb[4].mxu1 %v546_v61 }
  0xd4   : > { %800 = vmatmul.mubr.bf16.vlgmr.msra.gmra.mrb[4].mxu0 %v546_v61 }
 0x172   : > { %v474_v63 = vpop.f32.mrb[0].mxu1 }
 0x173   : > { %v403_v62 = vpop.f32.mrb[0].mxu0  ;;  %v1094_v1 = vpop.f32.mrb[1].mxu1  ;;  %v867_v13 = vadd.f32 %v861_v9, %v474_v63 }
 0x174   : > { %v405_v0 = vpop.f32.mrb[1].mxu0  ;;  %v865_v12 = vadd.f32 %v853_v8, %v403_v62 }
 0x175   : > { %v866_v14 = vadd.f32 %v857_v10, %v405_v0 }
 0x1a6   : > { %v842_v15 = vpop.f32.mrb[4].mxu1 }
 0x1a7   : > { %v801_v16 = vpop.f32.mrb[4].mxu0  ;;  %v870_v17 = vadd.f32 %v867_v13, %v842_v15  ;;  %v844_v20 = vpop.f32.mrb[5].mxu1 }
 0x1a8   : > { %v868_v18 = vadd.f32 %v865_v12, %v801_v16  ;;  %v803_v19 = vpop.f32.mrb[5].mxu0  ;;  %v845_v24 = vpop.f32.mrb[6].mxu1 }
 0x1a9   : > { %v869_v22 = vadd.f32 %v866_v14, %v803_v19  ;;  %v805_v23 = vpop.f32.mrb[6].mxu0  ;;  %v846_v26 = vpop.f32.mrb[7].mxu1  ;;  %v888_v28 = vrot.slane %v870_v17, %v880_v21 }
 0x1aa   : > { %v806_v25 = vpop.f32.mrb[7].mxu0 }
 0x1ab   : > { %v874_v27 = vcombine.low %v868_v18, %v869_v22 }
 0x1ad   : > { %v881_v29 = vrot.slane %v874_v27, %v880_v21 }
 0x1af   : > { %v889_v30 = vcombine.low %v881_v29, %v888_v28 }
 0x1b1   : > { %891 = vst [vmem:[%s316_s26] sm:$0x3f] %v889_v30 }
 0x1b2   : > { %1371 = shalt.err (!%p1368_p4)
}
 0x1b3   : > { %s1372_s8 = scalar_lea.hbm %s1768_s28, 96  ;;  %s1376_s27 = scalar_lea.hbm %s1817_s5, 192 }
 0x1b4   : > { %p1373_p0 = scmp.ne.s32.totalorder %s1768_s28, %s1372_s8  ;;  %p1377_p3 = scmp.lt.u32.totalorder %s1768_s28, %s1817_s5 }
 0x1b5   : > { %p1378_p12 = scmp.lt.u32.totalorder %s1376_s27, %s1372_s8  ;;  %p1380_p10 = scmp.lt.u32.totalorder %s1372_s8, %s1768_s28 }
 0x1b6   : > { %p1374_p6 = pnand %p1373_p0, %p1858_p1 }
 0x1b7   : > { %p1379_p8 = por %p1378_p12, %p1377_p3 }
 0x1b8   : > { %p1375_p13 = pneg %p1374_p6 }
 0x1b9   : > { %p1381_p11 = por %p1380_p10, %p1379_p8 }
 0x1bb   : > { %p1382_p9 = pnand %p1381_p11, %p1375_p13 }
 0x1bd   : > { %1385 = shalt.err (!%p1382_p9)
}
 0x1be   : > { %1119 = dma.vmem_to_hbm [thread:$0]  (%p1858_p1), %s1770_s13, 96, %s1768_s28, %s893_s0  }
 0x1bf PF: > { %s1859_s14 = sld [smem:[#allocation16_spill]]  ;;  %s919_s16 = sand.u32 1, %s1420_s18  }
 0x1c0   : > { %p1861_p7 = scmp.ge.s32.totalorder %s1432_s21, 2  ;;  %s920_s17 = scalar_lea.sflag [#allocation4], %s919_s16 }
 0x1c5   : > { %p1860_p2 = scmp.ne.s32.totalorder %s1859_s14, 0 }
 0x1c7   : > { %p1136_p5 = pnand %p1861_p7, %p1860_p2 }
 0x1c9   : > { %1415 = dma.done.wait (!%p1136_p5), %s920_s17, 96  }
 0x1ca   : > { %1417 = vsyncadd (!%p1136_p5), %s920_s17, 4294967200  ;;  %s1862_s21 = sld [smem:[#allocation14_spill]]  ;;  %s1863_s10 = sld [smem:[#allocation15_spill]] }
 0x1cb   : > { %s1864_s18 = smov %s1424_s19  ;;  %s1865_s19 = smov %s1428_s20 }
 0x1d0   : > { %p17_p4 = scmp.ge.s32.totalorder %s1862_s21, 4   ;;  %s1866_s20 = smov %s1863_s10 }
 0x1d2   :  { %19 = sbr.rel (!%p17_p4) target bundleno = 8 (0x8), region = 106 }
 0x1d9   :  { %925 = vsyncpa [#allocation3], 1 }
 0x1da   :  { %927 = vsyncpa [#allocation3 + $0x1], 1 }
 0x1db   :  { %928 = vsyncpa [#allocation6], 1 }
 0x1dc   :  { %929 = vsyncpa [#allocation4], 1 }
 0x1dd   :  { %931 = vsyncpa [#allocation4 + $0x1], 1 }

</bundles_post_ra>
